<compile_context>
chip_gen: v7x
topology: tpu7x:2x2x1
jax: 0.10.0
libtpu: 0.0.40
codegen_flags: <defaults>
</compile_context>

<pallas_src>
import jax
import jax.numpy as jnp
from jax import lax
from jax.experimental import pallas as pl
from jax.experimental.pallas import tpu as pltpu

# ---------------- configuration (matches ScConv defaults) ----------------
N, C, H, W = 2, 16, 16, 16          # batch, op_channel, spatial
G = 4                                # group_num for GroupNorm
GATE = 0.5                           # gate_treshold
EPS = 1e-5                           # nn.GroupNorm default eps
ALPHA = 0.5
SQUEEZE = 2
GROUP_SIZE = 2                       # groups for GWC
GK = 3                               # group_kernel_size

UP = int(ALPHA * C)                  # up_channel
LOW = C - UP                         # low_channel
UP_SQ = UP // SQUEEZE
LOW_SQ = LOW // SQUEEZE
HW = H * W
KBIG = GK * GK * UP + LOW            # contraction size of the fused CRU matmul

assert UP == C // 2                  # fused SRU reconstruct assumes alpha = 0.5


# ---------------------------- Pallas kernel ------------------------------
def scconv_kernel(x_ref, masks_ref, wsmall_ref, wbig_ref, o_ref, stack_ref):
    x = x_ref[...]                                  # (C, HW) f32, one sample
    ws = wsmall_ref[...]                            # (C, C+3) packed small params
    gmat = ws[:, :C]                                # group-average matrix (C, C)
    a_coef = ws[:, C:C + 1]                         # gamma * w_gamma      (C, 1)
    b_coef = ws[:, C + 1:C + 2]                     # beta  * w_gamma      (C, 1)
    gwc_b = ws[:, C + 2:C + 3]                      # GWC bias             (C, 1)

    # column of ones: turns per-channel lane sums into MXU matmuls
    ones_col = jnp.ones((HW, 1), dtype=jnp.float32)

    # ---------------- SRU: GroupNorm (centered, MXU sums) -----------------
    sx = jnp.dot(x, ones_col, preferred_element_type=jnp.float32)     # (C, 1)
    mean = jnp.dot(gmat, sx, preferred_element_type=jnp.float32)      # (C, 1)
    xc = x - mean                                                      # centered
    sxx = jnp.dot(xc * xc, ones_col,
                  preferred_element_type=jnp.float32)                 # (C, 1)
    var = jnp.dot(gmat, sxx, preferred_element_type=jnp.float32)      # (C, 1)
    rstd = lax.rsqrt(var + EPS)
    scale = a_coef * rstd                                              # (C, 1)
    shift = b_coef - mean * scale                                      # (C, 1)

    # gated reconstruct
    rw = jax.nn.sigmoid(x * scale + shift)
    cond = rw > GATE
    rx = rw * x
    x1 = jnp.where(cond, x, rx)
    x2 = jnp.where(cond, 0.0, rx)
    up = x1[:UP] + x2[UP:]                          # (UP,  HW) == y[:UP]
    low = x1[UP:] + x2[:UP]                         # (LOW, HW) == y[UP:]

    # ------- CRU: tap stack into VMEM scratch, then one fused matmul ------
    masks = masks_ref[...]                          # (9, HW), 0/1 f32
    for ky in range(GK):
        for kx in range(GK):
            t = ky * GK + kx
            off = (ky - GK // 2) * W + (kx - GK // 2)
            if off == 0:
                tap = up                            # center tap: always valid
            else:
                tap = (pltpu.roll(up, shift=(-off) % HW, axis=1)
                       * masks[t:t + 1, :])
            stack_ref[t * UP:(t + 1) * UP, :] = tap  # 8-row-aligned store
    stack_ref[GK * GK * UP:, :] = low

    big = jnp.dot(wbig_ref[...], stack_ref[...],
                  preferred_element_type=jnp.float32)   # (2C, HW)
    Y1 = big[:C] + gwc_b
    Y2 = big[C:]

    # -------- channel softmax on pooled (spatial-mean) values, final mix --
    inv_hw = jnp.float32(1.0 / HW)
    p1 = jnp.dot(Y1, ones_col, preferred_element_type=jnp.float32) * inv_hw
    p2 = jnp.dot(Y2, ones_col, preferred_element_type=jnp.float32) * inv_hw
    m = jnp.maximum(jnp.max(p1, axis=0, keepdims=True),
                    jnp.max(p2, axis=0, keepdims=True))            # (1, 1)
    e1 = jnp.exp(p1 - m)
    e2 = jnp.exp(p2 - m)
    denom = (jnp.sum(e1, axis=0, keepdims=True)
             + jnp.sum(e2, axis=0, keepdims=True))                 # (1, 1)
    s1 = e1 / denom                                                # (C, 1)
    s2 = e2 / denom
    o_ref[...] = s1 * Y1 + s2 * Y2


# ------------------------ host-side parameter prep ------------------------
def prepare_inputs(gamma, beta, sq1_w, sq2_w, gwc_w_grouped, gwc_b,
                   pwc1_w, pwc2_w):
    # block-diagonal dense GWC weight (C, UP_SQ, GK, GK)
    dense = jnp.zeros((C, UP_SQ, GK, GK), jnp.float32)
    cout_g = C // GROUP_SIZE
    cin_g = UP_SQ // GROUP_SIZE
    for g in range(GROUP_SIZE):
        dense = dense.at[g * cout_g:(g + 1) * cout_g,
                         g * cin_g:(g + 1) * cin_g].set(
            gwc_w_grouped[g * cout_g:(g + 1) * cout_g])

    # fused CRU weight (2C, KBIG):
    #  rows 0:C      -> per-tap GWC weight folded through squeeze1 (+PWC1 on
    #                   the center tap), acting on the 9 rolled "up" taps
    #  rows C:2C-LSQ -> PWC2 folded through squeeze2, acting on "low"
    #  rows 2C-LSQ:  -> squeeze2 itself (the identity part of Y2)
    w_big = jnp.zeros((2 * C, KBIG), jnp.float32)
    for ky in range(GK):
        for kx in range(GK):
            t = ky * GK + kx
            w_tap = dense[:, :, ky, kx] @ sq1_w              # (C, UP)
            if ky == GK // 2 and kx == GK // 2:
                w_tap = w_tap + pwc1_w @ sq1_w               # fold PWC1
            w_big = w_big.at[:C, t * UP:(t + 1) * UP].set(w_tap)
    base = GK * GK * UP
    w_big = w_big.at[C:2 * C - LOW_SQ, base:base + LOW].set(pwc2_w @ sq2_w)
    w_big = w_big.at[2 * C - LOW_SQ:, base:base + LOW].set(sq2_w)

    # packed small params: [group-avg matrix | gamma*w_gamma | beta*w_gamma | gwc bias]
    grp = jnp.arange(C) // (C // G)
    gmat = (grp[:, None] == grp[None, :]).astype(jnp.float32) / ((C // G) * HW)
    w_gamma = gamma / jnp.sum(gamma)
    wsmall = jnp.concatenate(
        [gmat, (gamma * w_gamma)[:, None], (beta * w_gamma)[:, None],
         gwc_b[:, None]], axis=1)                            # (C, C+3)

    # 3x3 boundary-validity masks on the flattened per-sample HW lane axis
    pix = jnp.arange(HW)
    hh = pix // W
    ww = pix % W
    rows = []
    for ky in range(GK):
        for kx in range(GK):
            dy, dx = ky - GK // 2, kx - GK // 2
            valid = ((hh + dy >= 0) & (hh + dy < H) &
                     (ww + dx >= 0) & (ww + dx < W))
            rows.append(valid.astype(jnp.float32))
    masks = jnp.stack(rows, axis=0)                          # (9, HW)
    return wsmall, w_big, masks


# ------------------------------ wrapper ----------------------------------
@jax.jit
def scconv_pallas(x_nchw, wsmall, w_big, masks):
    # free contiguous reshape only (no transpose): (N, C, H, W) -> (N, C, H*W)
    x = x_nchw.astype(jnp.float32).reshape(N, C, HW)
    out = pl.pallas_call(
        scconv_kernel,
        out_shape=jax.ShapeDtypeStruct((N, C, HW), jnp.float32),
        grid_spec=pltpu.PrefetchScalarGridSpec(
            num_scalar_prefetch=0,
            grid=(N,),
            in_specs=[
                pl.BlockSpec((None, C, HW), lambda n: (n, 0, 0)),   # x (per-sample)
                pl.BlockSpec((GK * GK, HW), lambda n: (0, 0)),      # tap masks
                pl.BlockSpec((C, C + 3), lambda n: (0, 0)),         # packed params
                pl.BlockSpec((2 * C, KBIG), lambda n: (0, 0)),      # fused CRU weight
            ],
            out_specs=pl.BlockSpec((None, C, HW), lambda n: (n, 0, 0)),
            scratch_shapes=[pltpu.VMEM((KBIG, HW), jnp.float32)],   # tap stack
        ),
        compiler_params=pltpu.CompilerParams(
            dimension_semantics=("parallel",)),
    )(x, masks, wsmall, w_big)
    return out.reshape(N, C, H, W)                # free contiguous reshape


# --------------------------- pure-JAX reference ---------------------------
def scconv_reference(x, gamma, beta, sq1_w, sq2_w, gwc_w_grouped, gwc_b,
                     pwc1_w, pwc2_w):
    n, c, h, w = x.shape
    xg = x.reshape(n, G, -1)
    mean = xg.mean(axis=2, keepdims=True)
    var = xg.var(axis=2, keepdims=True)          # biased, like nn.GroupNorm
    gn = ((xg - mean) / jnp.sqrt(var + EPS)).reshape(n, c, h, w)
    gn = gn * gamma.reshape(1, c, 1, 1) + beta.reshape(1, c, 1, 1)

    w_gamma = (gamma / gamma.sum()).reshape(1, c, 1, 1)
    rw = jax.nn.sigmoid(gn * w_gamma)
    w1 = jnp.where(rw > GATE, 1.0, rw)
    w2 = jnp.where(rw > GATE, 0.0, rw)
    x1 = w1 * x
    x2 = w2 * x
    half = c // 2
    y = jnp.concatenate([x1[:, :half] + x2[:, half:],
                         x1[:, half:] + x2[:, :half]], axis=1)

    up, low = y[:, :UP], y[:, UP:]
    up_s = jnp.einsum('oi,nihw->nohw', sq1_w, up)
    low_s = jnp.einsum('oi,nihw->nohw', sq2_w, low)

    ygwc = lax.conv_general_dilated(
        up_s, gwc_w_grouped, window_strides=(1, 1), padding='SAME',
        dimension_numbers=('NCHW', 'OIHW', 'NCHW'),
        feature_group_count=GROUP_SIZE) + gwc_b.reshape(1, c, 1, 1)
    Y1 = ygwc + jnp.einsum('oi,nihw->nohw', pwc1_w, up_s)
    Y2 = jnp.concatenate([jnp.einsum('oi,nihw->nohw', pwc2_w, low_s), low_s],
                         axis=1)
    out = jnp.concatenate([Y1, Y2], axis=1)
    pooled = out.mean(axis=(2, 3), keepdims=True)
    soft = jax.nn.softmax(pooled, axis=1)
    out = soft * out
    return out[:, :c] + out[:, c:]


# ------------------------------- main -------------------------------------
if __name__ == "__main__":
    key = jax.random.PRNGKey(0)
    ks = jax.random.split(key, 9)

    x = jax.random.normal(ks[0], (N, C, H, W), dtype=jnp.float32)

    # deterministic synthetic parameters (shapes follow the module __init__)
    gamma = 1.0 + 0.1 * jax.random.normal(ks[1], (C,), dtype=jnp.float32)
    beta = 0.05 * jax.random.normal(ks[2], (C,), dtype=jnp.float32)
    sq1_w = 0.2 * jax.random.normal(ks[3], (UP_SQ, UP), dtype=jnp.float32)
    sq2_w = 0.2 * jax.random.normal(ks[4], (LOW_SQ, LOW), dtype=jnp.float32)
    gwc_w_grouped = 0.2 * jax.random.normal(
        ks[5], (C, UP_SQ // GROUP_SIZE, GK, GK), dtype=jnp.float32)
    gwc_b = 0.1 * jax.random.normal(ks[6], (C,), dtype=jnp.float32)
    pwc1_w = 0.2 * jax.random.normal(ks[7], (C, UP_SQ), dtype=jnp.float32)
    pwc2_w = 0.2 * jax.random.normal(ks[8], (C - LOW_SQ, LOW_SQ),
                                     dtype=jnp.float32)

    wsmall, w_big, masks = prepare_inputs(gamma, beta, sq1_w, sq2_w,
                                          gwc_w_grouped, gwc_b,
                                          pwc1_w, pwc2_w)

    out = scconv_pallas(x, wsmall, w_big, masks)
    out = jax.block_until_ready(out)

    ref = scconv_reference(x, gamma, beta, sq1_w, sq2_w, gwc_w_grouped, gwc_b,
                           pwc1_w, pwc2_w)
    if not bool(jnp.allclose(out, ref, atol=1e-4, rtol=1e-4)):
        raise SystemExit("mismatch vs. reference: max abs err = %e"
                         % float(jnp.max(jnp.abs(out - ref))))
    print("KERNEL_OK")
</pallas_src>

<mosaic_0001>
module attributes {stable_mosaic.version = 11 : i64} {
  func.func @scconv_kernel(%arg0: i32, %arg1: memref<1x16x256xf32, #tpu.memory_space<vmem>>, %arg2: memref<9x256xf32, #tpu.memory_space<vmem>>, %arg3: memref<16x19xf32, #tpu.memory_space<vmem>>, %arg4: memref<32x80xf32, #tpu.memory_space<vmem>>, %arg5: memref<1x16x256xf32, #tpu.memory_space<vmem>>, %arg6: memref<80x256xf32, #tpu.memory_space<vmem>>) attributes {dimension_semantics = [#tpu.dimension_semantics<parallel>], iteration_bounds = array<i64: 2>, scalar_prefetch = 0 : i64, scratch_operands = 1 : i64, tpu.core_type = #tpu.core_type<tc>, window_params = [{transform_indices = @transform_0, window_bounds = array<i64: 1, 16, 256>}, {pipeline_mode = #tpu.pipeline_mode<synchronous>, transform_indices = @transform_1, window_bounds = array<i64: 9, 256>}, {pipeline_mode = #tpu.pipeline_mode<synchronous>, transform_indices = @transform_2, window_bounds = array<i64: 16, 19>}, {pipeline_mode = #tpu.pipeline_mode<synchronous>, transform_indices = @transform_3, window_bounds = array<i64: 32, 80>}, {transform_indices = @transform_4, window_bounds = array<i64: 1, 16, 256>}]} {
    %c0 = arith.constant 0 : index
    %c0_0 = arith.constant 0 : index
    %c0_1 = arith.constant 0 : index
    %0 = vector.load %arg1[%c0, %c0_0, %c0_1] : memref<1x16x256xf32, #tpu.memory_space<vmem>>, vector<1x16x256xf32>
    %1 = vector.shape_cast %0 : vector<1x16x256xf32> to vector<16x256xf32>
    %c0_2 = arith.constant 0 : index
    %c0_3 = arith.constant 0 : index
    %2 = vector.load %arg3[%c0_2, %c0_3] : memref<16x19xf32, #tpu.memory_space<vmem>>, vector<16x19xf32>
    %3 = vector.extract_strided_slice %2 {offsets = [0, 0], sizes = [16, 16], strides = [1, 1]} : vector<16x19xf32> to vector<16x16xf32>
    %4 = vector.extract_strided_slice %2 {offsets = [0, 16], sizes = [16, 1], strides = [1, 1]} : vector<16x19xf32> to vector<16x1xf32>
    %5 = vector.extract_strided_slice %2 {offsets = [0, 17], sizes = [16, 1], strides = [1, 1]} : vector<16x19xf32> to vector<16x1xf32>
    %6 = vector.extract_strided_slice %2 {offsets = [0, 18], sizes = [16, 1], strides = [1, 1]} : vector<16x19xf32> to vector<16x1xf32>
    %cst = arith.constant 1.000000e+00 : f32
    %7 = vector.broadcast %cst : f32 to vector<256x1xf32>
    %cst_4 = arith.constant dense<0.000000e+00> : vector<16x1xf32>
    %8 = tpu.matmul %1, %7, %cst_4 {dimension_numbers = #tpu.dot_dimension_numbers<[1], [0], [0], [1], [0, 0, 1, 1], [], []>} : vector<16x256xf32>, vector<256x1xf32>, vector<16x1xf32> -> vector<16x1xf32>
    %cst_5 = arith.constant dense<0.000000e+00> : vector<16x1xf32>
    %9 = tpu.matmul %3, %8, %cst_5 {dimension_numbers = #tpu.dot_dimension_numbers<[1], [0], [0], [1], [0, 0, 1, 1], [], []>} : vector<16x16xf32>, vector<16x1xf32>, vector<16x1xf32> -> vector<16x1xf32>
    %10 = vector.broadcast %9 : vector<16x1xf32> to vector<16x256xf32>
    %11 = arith.subf %1, %10 : vector<16x256xf32>
    %12 = arith.mulf %11, %11 : vector<16x256xf32>
    %cst_6 = arith.constant dense<0.000000e+00> : vector<16x1xf32>
    %13 = tpu.matmul %12, %7, %cst_6 {dimension_numbers = #tpu.dot_dimension_numbers<[1], [0], [0], [1], [0, 0, 1, 1], [], []>} : vector<16x256xf32>, vector<256x1xf32>, vector<16x1xf32> -> vector<16x1xf32>
    %cst_7 = arith.constant dense<0.000000e+00> : vector<16x1xf32>
    %14 = tpu.matmul %3, %13, %cst_7 {dimension_numbers = #tpu.dot_dimension_numbers<[1], [0], [0], [1], [0, 0, 1, 1], [], []>} : vector<16x16xf32>, vector<16x1xf32>, vector<16x1xf32> -> vector<16x1xf32>
    %cst_8 = arith.constant 9.99999974E-6 : f32
    %15 = vector.broadcast %cst_8 : f32 to vector<16x1xf32>
    %16 = arith.addf %14, %15 : vector<16x1xf32>
    %17 = math.rsqrt %16 : vector<16x1xf32>
    %18 = arith.mulf %4, %17 : vector<16x1xf32>
    %19 = arith.mulf %9, %18 : vector<16x1xf32>
    %20 = arith.subf %5, %19 : vector<16x1xf32>
    %21 = vector.broadcast %18 : vector<16x1xf32> to vector<16x256xf32>
    %22 = arith.mulf %1, %21 : vector<16x256xf32>
    %23 = vector.broadcast %20 : vector<16x1xf32> to vector<16x256xf32>
    %24 = arith.addf %22, %23 : vector<16x256xf32>
    %25 = arith.negf %24 : vector<16x256xf32>
    %26 = math.exp %25 : vector<16x256xf32>
    %cst_9 = arith.constant 1.000000e+00 : f32
    %27 = vector.broadcast %cst_9 : f32 to vector<16x256xf32>
    %28 = arith.addf %27, %26 : vector<16x256xf32>
    %29 = arith.divf %27, %28 : vector<16x256xf32>
    %cst_10 = arith.constant 5.000000e-01 : f32
    %30 = vector.broadcast %cst_10 : f32 to vector<16x256xf32>
    %31 = arith.cmpf ogt, %29, %30 : vector<16x256xf32>
    %32 = arith.mulf %29, %1 : vector<16x256xf32>
    %33 = arith.select %31, %1, %32 : vector<16x256xi1>, vector<16x256xf32>
    %cst_11 = arith.constant 0.000000e+00 : f32
    %34 = vector.broadcast %cst_11 : f32 to vector<16x256xf32>
    %35 = arith.select %31, %34, %32 : vector<16x256xi1>, vector<16x256xf32>
    %36 = vector.extract_strided_slice %33 {offsets = [0, 0], sizes = [8, 256], strides = [1, 1]} : vector<16x256xf32> to vector<8x256xf32>
    %37 = vector.extract_strided_slice %35 {offsets = [8, 0], sizes = [8, 256], strides = [1, 1]} : vector<16x256xf32> to vector<8x256xf32>
    %38 = arith.addf %36, %37 : vector<8x256xf32>
    %39 = vector.extract_strided_slice %33 {offsets = [8, 0], sizes = [8, 256], strides = [1, 1]} : vector<16x256xf32> to vector<8x256xf32>
    %40 = vector.extract_strided_slice %35 {offsets = [0, 0], sizes = [8, 256], strides = [1, 1]} : vector<16x256xf32> to vector<8x256xf32>
    %41 = arith.addf %39, %40 : vector<8x256xf32>
    %c0_12 = arith.constant 0 : index
    %c0_13 = arith.constant 0 : index
    %42 = vector.load %arg2[%c0_12, %c0_13] : memref<9x256xf32, #tpu.memory_space<vmem>>, vector<9x256xf32>
    %c17_i32 = arith.constant 17 : i32
    %43 = tpu.dynamic_rotate %38 by %c17_i32 dim 1 : vector<8x256xf32>, i32 -> vector<8x256xf32>
    %44 = vector.extract_strided_slice %42 {offsets = [0, 0], sizes = [1, 256], strides = [1, 1]} : vector<9x256xf32> to vector<1x256xf32>
    %45 = vector.broadcast %44 : vector<1x256xf32> to vector<8x256xf32>
    %46 = arith.mulf %43, %45 : vector<8x256xf32>
    %c0_14 = arith.constant 0 : index
    %c0_15 = arith.constant 0 : index
    %47 = vector.load %arg6[%c0_14, %c0_15] : memref<80x256xf32, #tpu.memory_space<vmem>>, vector<8x256xf32>
    tpu.vector_store %arg6[%c0_14, %c0_15], %46 {strides = array<i32>} : memref<80x256xf32, #tpu.memory_space<vmem>>, vector<8x256xf32>,
    %c16_i32 = arith.constant 16 : i32
    %48 = tpu.dynamic_rotate %38 by %c16_i32 dim 1 : vector<8x256xf32>, i32 -> vector<8x256xf32>
    %49 = vector.extract_strided_slice %42 {offsets = [1, 0], sizes = [1, 256], strides = [1, 1]} : vector<9x256xf32> to vector<1x256xf32>
    %50 = vector.broadcast %49 : vector<1x256xf32> to vector<8x256xf32>
    %51 = arith.mulf %48, %50 : vector<8x256xf32>
    %c8 = arith.constant 8 : index
    %c0_16 = arith.constant 0 : index
    %52 = vector.load %arg6[%c8, %c0_16] : memref<80x256xf32, #tpu.memory_space<vmem>>, vector<8x256xf32>
    tpu.vector_store %arg6[%c8, %c0_16], %51 {strides = array<i32>} : memref<80x256xf32, #tpu.memory_space<vmem>>, vector<8x256xf32>,
    %c15_i32 = arith.constant 15 : i32
    %53 = tpu.dynamic_rotate %38 by %c15_i32 dim 1 : vector<8x256xf32>, i32 -> vector<8x256xf32>
    %54 = vector.extract_strided_slice %42 {offsets = [2, 0], sizes = [1, 256], strides = [1, 1]} : vector<9x256xf32> to vector<1x256xf32>
    %55 = vector.broadcast %54 : vector<1x256xf32> to vector<8x256xf32>
    %56 = arith.mulf %53, %55 : vector<8x256xf32>
    %c16 = arith.constant 16 : index
    %c0_17 = arith.constant 0 : index
    %57 = vector.load %arg6[%c16, %c0_17] : memref<80x256xf32, #tpu.memory_space<vmem>>, vector<8x256xf32>
    tpu.vector_store %arg6[%c16, %c0_17], %56 {strides = array<i32>} : memref<80x256xf32, #tpu.memory_space<vmem>>, vector<8x256xf32>,
    %c1_i32 = arith.constant 1 : i32
    %58 = tpu.dynamic_rotate %38 by %c1_i32 dim 1 : vector<8x256xf32>, i32 -> vector<8x256xf32>
    %59 = vector.extract_strided_slice %42 {offsets = [3, 0], sizes = [1, 256], strides = [1, 1]} : vector<9x256xf32> to vector<1x256xf32>
    %60 = vector.broadcast %59 : vector<1x256xf32> to vector<8x256xf32>
    %61 = arith.mulf %58, %60 : vector<8x256xf32>
    %c24 = arith.constant 24 : index
    %c0_18 = arith.constant 0 : index
    %62 = vector.load %arg6[%c24, %c0_18] : memref<80x256xf32, #tpu.memory_space<vmem>>, vector<8x256xf32>
    tpu.vector_store %arg6[%c24, %c0_18], %61 {strides = array<i32>} : memref<80x256xf32, #tpu.memory_space<vmem>>, vector<8x256xf32>,
    %c32 = arith.constant 32 : index
    %c0_19 = arith.constant 0 : index
    %63 = vector.load %arg6[%c32, %c0_19] : memref<80x256xf32, #tpu.memory_space<vmem>>, vector<8x256xf32>
    tpu.vector_store %arg6[%c32, %c0_19], %38 {strides = array<i32>} : memref<80x256xf32, #tpu.memory_space<vmem>>, vector<8x256xf32>,
    %c255_i32 = arith.constant 255 : i32
    %64 = tpu.dynamic_rotate %38 by %c255_i32 dim 1 : vector<8x256xf32>, i32 -> vector<8x256xf32>
    %65 = vector.extract_strided_slice %42 {offsets = [5, 0], sizes = [1, 256], strides = [1, 1]} : vector<9x256xf32> to vector<1x256xf32>
    %66 = vector.broadcast %65 : vector<1x256xf32> to vector<8x256xf32>
    %67 = arith.mulf %64, %66 : vector<8x256xf32>
    %c40 = arith.constant 40 : index
    %c0_20 = arith.constant 0 : index
    %68 = vector.load %arg6[%c40, %c0_20] : memref<80x256xf32, #tpu.memory_space<vmem>>, vector<8x256xf32>
    tpu.vector_store %arg6[%c40, %c0_20], %67 {strides = array<i32>} : memref<80x256xf32, #tpu.memory_space<vmem>>, vector<8x256xf32>,
    %c241_i32 = arith.constant 241 : i32
    %69 = tpu.dynamic_rotate %38 by %c241_i32 dim 1 : vector<8x256xf32>, i32 -> vector<8x256xf32>
    %70 = vector.extract_strided_slice %42 {offsets = [6, 0], sizes = [1, 256], strides = [1, 1]} : vector<9x256xf32> to vector<1x256xf32>
    %71 = vector.broadcast %70 : vector<1x256xf32> to vector<8x256xf32>
    %72 = arith.mulf %69, %71 : vector<8x256xf32>
    %c48 = arith.constant 48 : index
    %c0_21 = arith.constant 0 : index
    %73 = vector.load %arg6[%c48, %c0_21] : memref<80x256xf32, #tpu.memory_space<vmem>>, vector<8x256xf32>
    tpu.vector_store %arg6[%c48, %c0_21], %72 {strides = array<i32>} : memref<80x256xf32, #tpu.memory_space<vmem>>, vector<8x256xf32>,
    %c240_i32 = arith.constant 240 : i32
    %74 = tpu.dynamic_rotate %38 by %c240_i32 dim 1 : vector<8x256xf32>, i32 -> vector<8x256xf32>
    %75 = vector.extract_strided_slice %42 {offsets = [7, 0], sizes = [1, 256], strides = [1, 1]} : vector<9x256xf32> to vector<1x256xf32>
    %76 = vector.broadcast %75 : vector<1x256xf32> to vector<8x256xf32>
    %77 = arith.mulf %74, %76 : vector<8x256xf32>
    %c56 = arith.constant 56 : index
    %c0_22 = arith.constant 0 : index
    %78 = vector.load %arg6[%c56, %c0_22] : memref<80x256xf32, #tpu.memory_space<vmem>>, vector<8x256xf32>
    tpu.vector_store %arg6[%c56, %c0_22], %77 {strides = array<i32>} : memref<80x256xf32, #tpu.memory_space<vmem>>, vector<8x256xf32>,
    %c239_i32 = arith.constant 239 : i32
    %79 = tpu.dynamic_rotate %38 by %c239_i32 dim 1 : vector<8x256xf32>, i32 -> vector<8x256xf32>
    %80 = vector.extract_strided_slice %42 {offsets = [8, 0], sizes = [1, 256], strides = [1, 1]} : vector<9x256xf32> to vector<1x256xf32>
    %81 = vector.broadcast %80 : vector<1x256xf32> to vector<8x256xf32>
    %82 = arith.mulf %79, %81 : vector<8x256xf32>
    %c64 = arith.constant 64 : index
    %c0_23 = arith.constant 0 : index
    %83 = vector.load %arg6[%c64, %c0_23] : memref<80x256xf32, #tpu.memory_space<vmem>>, vector<8x256xf32>
    tpu.vector_store %arg6[%c64, %c0_23], %82 {strides = array<i32>} : memref<80x256xf32, #tpu.memory_space<vmem>>, vector<8x256xf32>,
    %c72 = arith.constant 72 : index
    %c0_24 = arith.constant 0 : index
    %84 = vector.load %arg6[%c72, %c0_24] : memref<80x256xf32, #tpu.memory_space<vmem>>, vector<8x256xf32>
    tpu.vector_store %arg6[%c72, %c0_24], %41 {strides = array<i32>} : memref<80x256xf32, #tpu.memory_space<vmem>>, vector<8x256xf32>,
    %c0_25 = arith.constant 0 : index
    %c0_26 = arith.constant 0 : index
    %85 = vector.load %arg4[%c0_25, %c0_26] : memref<32x80xf32, #tpu.memory_space<vmem>>, vector<32x80xf32>
    %c0_27 = arith.constant 0 : index
    %c0_28 = arith.constant 0 : index
    %86 = vector.load %arg6[%c0_27, %c0_28] : memref<80x256xf32, #tpu.memory_space<vmem>>, vector<80x256xf32>
    %cst_29 = arith.constant dense<0.000000e+00> : vector<32x256xf32>
    %87 = tpu.matmul %85, %86, %cst_29 {dimension_numbers = #tpu.dot_dimension_numbers<[1], [0], [0], [1], [0, 0, 1, 1], [], []>} : vector<32x80xf32>, vector<80x256xf32>, vector<32x256xf32> -> vector<32x256xf32>
    %88 = vector.extract_strided_slice %87 {offsets = [0, 0], sizes = [16, 256], strides = [1, 1]} : vector<32x256xf32> to vector<16x256xf32>
    %89 = vector.broadcast %6 : vector<16x1xf32> to vector<16x256xf32>
    %90 = arith.addf %88, %89 : vector<16x256xf32>
    %91 = vector.extract_strided_slice %87 {offsets = [16, 0], sizes = [16, 256], strides = [1, 1]} : vector<32x256xf32> to vector<16x256xf32>
    %cst_30 = arith.constant dense<0.000000e+00> : vector<16x1xf32>
    %92 = tpu.matmul %90, %7, %cst_30 {dimension_numbers = #tpu.dot_dimension_numbers<[1], [0], [0], [1], [0, 0, 1, 1], [], []>} : vector<16x256xf32>, vector<256x1xf32>, vector<16x1xf32> -> vector<16x1xf32>
    %cst_31 = arith.constant 3.906250e-03 : f32
    %93 = vector.broadcast %cst_31 : f32 to vector<16x1xf32>
    %94 = arith.mulf %92, %93 : vector<16x1xf32>
    %cst_32 = arith.constant dense<0.000000e+00> : vector<16x1xf32>
    %95 = tpu.matmul %91, %7, %cst_32 {dimension_numbers = #tpu.dot_dimension_numbers<[1], [0], [0], [1], [0, 0, 1, 1], [], []>} : vector<16x256xf32>, vector<256x1xf32>, vector<16x1xf32> -> vector<16x1xf32>
    %cst_33 = arith.constant 3.906250e-03 : f32
    %96 = vector.broadcast %cst_33 : f32 to vector<16x1xf32>
    %97 = arith.mulf %95, %96 : vector<16x1xf32>
    %cst_34 = arith.constant dense<0xFF800000> : vector<1xf32>
    %98 = vector.multi_reduction <maximumf>, %94, %cst_34 [0] : vector<16x1xf32> to vector<1xf32>
    %99 = vector.shape_cast %98 : vector<1xf32> to vector<1x1xf32>
    %cst_35 = arith.constant dense<0xFF800000> : vector<1xf32>
    %100 = vector.multi_reduction <maximumf>, %97, %cst_35 [0] : vector<16x1xf32> to vector<1xf32>
    %101 = vector.shape_cast %100 : vector<1xf32> to vector<1x1xf32>
    %102 = arith.maximumf %99, %101 : vector<1x1xf32>
    %103 = vector.broadcast %102 : vector<1x1xf32> to vector<16x1xf32>
    %104 = arith.subf %94, %103 : vector<16x1xf32>
    %105 = math.exp %104 : vector<16x1xf32>
    %106 = vector.broadcast %102 : vector<1x1xf32> to vector<16x1xf32>
    %107 = arith.subf %97, %106 : vector<16x1xf32>
    %108 = math.exp %107 : vector<16x1xf32>
    %cst_36 = arith.constant dense<0.000000e+00> : vector<1xf32>
    %109 = vector.multi_reduction <add>, %105, %cst_36 [0] : vector<16x1xf32> to vector<1xf32>
    %110 = vector.shape_cast %109 : vector<1xf32> to vector<1x1xf32>
    %cst_37 = arith.constant dense<0.000000e+00> : vector<1xf32>
    %111 = vector.multi_reduction <add>, %108, %cst_37 [0] : vector<16x1xf32> to vector<1xf32>
    %112 = vector.shape_cast %111 : vector<1xf32> to vector<1x1xf32>
    %113 = arith.addf %110, %112 : vector<1x1xf32>
    %114 = vector.broadcast %113 : vector<1x1xf32> to vector<16x1xf32>
    %115 = arith.divf %105, %114 : vector<16x1xf32>
    %116 = vector.broadcast %113 : vector<1x1xf32> to vector<16x1xf32>
    %117 = arith.divf %108, %116 : vector<16x1xf32>
    %118 = vector.broadcast %115 : vector<16x1xf32> to vector<16x256xf32>
    %119 = arith.mulf %118, %90 : vector<16x256xf32>
    %120 = vector.broadcast %117 : vector<16x1xf32> to vector<16x256xf32>
    %121 = arith.mulf %120, %91 : vector<16x256xf32>
    %122 = arith.addf %119, %121 : vector<16x256xf32>
    %c0_38 = arith.constant 0 : index
    %c0_39 = arith.constant 0 : index
    %c0_40 = arith.constant 0 : index
    %123 = vector.load %arg5[%c0_38, %c0_39, %c0_40] : memref<1x16x256xf32, #tpu.memory_space<vmem>>, vector<1x16x256xf32>
    %124 = vector.shape_cast %123 : vector<1x16x256xf32> to vector<16x256xf32>
    %125 = vector.shape_cast %122 : vector<16x256xf32> to vector<1x16x256xf32>
    tpu.vector_store %arg5[%c0_38, %c0_39, %c0_40], %125 {strides = array<i32>} : memref<1x16x256xf32, #tpu.memory_space<vmem>>, vector<1x16x256xf32>,
    return
  }
  func.func @transform_0(%arg0: i32) -> (i32, i32, i32) {
    %c0_i32 = arith.constant 0 : i32
    %c0_i32_0 = arith.constant 0 : i32
    %c0_i32_1 = arith.constant 0 : i32
    return %arg0, %c0_i32, %c0_i32_0 : i32, i32, i32
  }
  func.func @transform_1(%arg0: i32) -> (i32, i32) {
    %c0_i32 = arith.constant 0 : i32
    %c0_i32_0 = arith.constant 0 : i32
    %c0_i32_1 = arith.constant 0 : i32
    return %c0_i32, %c0_i32_0 : i32, i32
  }
  func.func @transform_2(%arg0: i32) -> (i32, i32) {
    %c0_i32 = arith.constant 0 : i32
    %c0_i32_0 = arith.constant 0 : i32
    %c0_i32_1 = arith.constant 0 : i32
    return %c0_i32, %c0_i32_0 : i32, i32
  }
  func.func @transform_3(%arg0: i32) -> (i32, i32) {
    %c0_i32 = arith.constant 0 : i32
    %c0_i32_0 = arith.constant 0 : i32
    %c0_i32_1 = arith.constant 0 : i32
    return %c0_i32, %c0_i32_0 : i32, i32
  }
  func.func @transform_4(%arg0: i32) -> (i32, i32, i32) {
    %c0_i32 = arith.constant 0 : i32
    %c0_i32_0 = arith.constant 0 : i32
    %c0_i32_1 = arith.constant 0 : i32
    return %arg0, %c0_i32, %c0_i32_0 : i32, i32, i32
  }
}

</mosaic_0001>

<bundles_post_ra>
// kernel: scconv_pallas.1
= control target key start
LH: loop header
LB: loop body
LE: loop exit
PB: predicated region body
PF: predicated region fallthrough
CT: control target
= control target key end

     0   :  { %s1633_s15 = smov 0   ;;  %s1941_s0 = inlined_call_operand.vmem [shape: f32[2,16,256], index: 0, kind: input, shape index: {}]   ;;  %s1942_s1 = inlined_call_operand.vmem [shape: f32[9,256], index: 1, kind: input, shape index: {}]   ;;  %s1943_s2 = inlined_call_operand.vmem [shape: f32[16,19], index: 2, kind: input, shape index: {}]   ;;  %s1944_s3 = inlined_call_operand.vmem [shape: f32[32,80], index: 3, kind: input, shape index: {}]   ;;  %s1945_s4 = inlined_call_operand.vmem [shape: f32[2,16,256], index: 4, kind: output, shape index: {}]  }
   0x1 LB: > { %s1232_s16 = sadd.s32 4294967295, %s1592_s15   ;;  %p1236_p0 = scmp.ge.s32.totalorder %s1592_s15, 1  ;;  %s1592_s15 = sphi %s1633_s15, %s14_s15  }
   0x2   : > { %p162_p1 = scmp.lt.s32.totalorder %s1592_s15, 3 }
   0x4   : > { %p163_p2 = pnand %p1236_p0, %p162_p1 }
   0x5   : > { %p188_p3 = scmp.lt.s32.totalorder (!%p163_p2), %s1232_s16, 1  ;;  %v1594_v0 = vmov (!%p163_p2), 1.0|1.0   ;;  %v1702_v5 = vld [vmem:[%s1943_s2] sm:$0xff] (!%p163_p2)  ;;  %vm279_vm0 = vcmask (!%p163_p2), 130048   ;;  %v1709_v13 = vld [vmem:[%s1943_s2 + $0x8] sm:$0xff] (!%p163_p2) }
   0x6   : > { %166 = sbr.rel (%p163_p2) target bundleno = 2381 (0x94d), region = 36  ;;  %1433 = vmatprep.subr.bf16.mxu0 (!%p163_p2), %v1594_v0  ;;  %1453 = vmatprep.subr.bf16.mxu1 (!%p163_p2), %v1594_v0  ;;  %v1595_v14 = vmov (!%p163_p2), 0   ;;  %s1596_s25 = smov (!%p163_p2), 16   ;;  %v1597_v40 = vmov (!%p163_p2), 16   ;;  %v1600_v49 = vmov (!%p163_p2), 17   ;;  %vm817_vm13 = vcmask (!%p163_p2), 654336  }
   0x7   : > { %1434 = vmatpush3.bf16.msra.mxu0 (!%p163_p2), %v1594_v0  ;;  %1454 = vmatpush3.bf16.msra.mxu1 (!%p163_p2), %v1594_v0  ;;  %s1598_s26 = smov (!%p163_p2), 112   ;;  %s1599_s27 = smov (!%p163_p2), 17   ;;  %vm1085_vm14 = vcmask (!%p163_p2), 7168  }
   0x8   : > { %1435 = vmatprep.subr.bf16.mxu0 (!%p163_p2), %v1594_v0  ;;  %1455 = vmatprep.subr.bf16.mxu1 (!%p163_p2), %v1594_v0  ;;  %s1601_s28 = smov (!%p163_p2), 15   ;;  %s1602_s29 = smov (!%p163_p2), 1  }
   0x9   : > { %1547 = vset.pattern.permute.xlu0 (!%p163_p2), %v1595_v14  ;;  %1549 = vset.pattern.permute.xlu1 (!%p163_p2), %v1597_v40  ;;  %s1603_s30 = smov (!%p163_p2), 127   ;;  %s1604_s5 = smov (!%p163_p2), 113  }
   0xa   : > { %s1605_s6 = smov (!%p163_p2), 111  }
   0xb   : > { %1436 = vmatpush3.bf16.msra.mxu0 (!%p163_p2), %v1594_v0  ;;  %1456 = vmatpush3.bf16.msra.mxu1 (!%p163_p2), %v1594_v0 }
   0xc   : > { %1437 = vmatprep.subr.bf16.mxu0 (!%p163_p2), %v1594_v0  ;;  %1457 = vmatprep.subr.bf16.mxu1 (!%p163_p2), %v1594_v0 }
   0xd   : > { %s1947_s16 = smov (!%p188_p3, %s1232_s16), 1 }
   0xe   : > { %s1257_s17 = sshll.u32 %s1947_s16, 5 }
   0xf   : > { %s1655_s20 = scalar_lea.vmem %s1941_s0, %s1257_s17  ;;  %1438 = vmatpush3.bf16.msra.mxu0 %v1594_v0  ;;  %1458 = vmatpush3.bf16.msra.mxu1 %v1594_v0 }
  0x10   : > { %v1659_v1 = vld [vmem:[%s1655_s20 + $0x8] sm:$0xff]  ;;  %1439 = vmatprep.subr.bf16.mxu0 %v1594_v0  ;;  %1459 = vmatprep.subr.bf16.mxu1 %v1594_v0  ;;  %v1687_v2 = vld [vmem:[%s1655_s20] sm:$0xff]  ;;  %v1691_v3 = vld [vmem:[%s1655_s20 + $0x18] sm:$0xff] }
  0x11   : > { %268 = vmatprep.mubr.f32.mxu0 %v1659_v1  ;;  %v1696_v4 = vld [vmem:[%s1655_s20 + $0x10] sm:$0xff] }
  0x13   : > { %1440 = vmatpush3.bf16.msra.mxu0 %v1594_v0  ;;  %1460 = vmatpush3.bf16.msra.mxu1 %v1594_v0 }
  0x14   : > { %1441 = vmatprep.subr.bf16.mxu0 %v1594_v0  ;;  %1461 = vmatprep.subr.bf16.mxu1 %v1594_v0 }
  0x17   : > { %1442 = vmatpush3.bf16.msra.mxu0 %v1594_v0  ;;  %1462 = vmatpush3.bf16.msra.mxu1 %v1594_v0 }
  0x18   : > { %1443 = vmatprep.subr.bf16.mxu0 %v1594_v0  ;;  %1463 = vmatprep.subr.bf16.mxu1 %v1594_v0 }
  0x1b   : > { %1444 = vmatpush3.bf16.msra.mxu0 %v1594_v0  ;;  %1464 = vmatpush3.bf16.msra.mxu1 %v1594_v0 }
  0x1c   : > { %1445 = vmatprep.subr.bf16.mxu0 %v1594_v0  ;;  %1465 = vmatprep.subr.bf16.mxu1 %v1594_v0 }
  0x1f   : > { %1446 = vmatpush3.bf16.msra.mxu0 %v1594_v0  ;;  %1466 = vmatpush3.bf16.msra.mxu1 %v1594_v0 }
  0x20   : > { %1447 = vmatprep.subr.bf16.mxu0 %v1594_v0  ;;  %1467 = vmatprep.subr.bf16.mxu1 %v1594_v0 }
  0x23   : > { %1448 = vmatpush3.bf16.msra.mxu0 %v1594_v0  ;;  %1468 = vmatpush3.bf16.msra.mxu1 %v1594_v0 }
  0x26   : > { %269 = vmatmul.mubr.f32.vlgmr.msra.gmra.mrb[0].mxu0 %v1687_v2 }
  0x27   : > { %273 = vmatprep.mubr.f32.mxu0 %v1691_v3 }
  0x2a   : > { %274 = vmatmul.mubr.f32.gmra.mrb[2].mxu0 %v1696_v4 }
  0x2b   : > { %1423 = vmatprep.mubr.msk.f32.mxu0 %vm279_vm0, %v1702_v5 }
  0xf9   : > { %v1291_v6 = vpop.f32.mrb[0].mxu0 }
  0xfa   : > { %v1292_v7 = vpop.f32.mrb[1].mxu0 }
  0xfb   : > { %v1293_v8 = vadd.f32 %v1292_v7, %v1291_v6 }
  0xfd   : > { %v1294_v9 = vpop.f32.mrb[2].mxu0 }
  0xfe   : > { %v1295_v10 = vpop.f32.mrb[3].mxu0 }
  0xff   : > { %v1296_v11 = vadd.f32 %v1295_v10, %v1294_v9 }
 0x101   : > { %v1449_v12 = vpack.c.bf16 %v1296_v11, %v1293_v8 }
 0x103   : > { %1450 = vmatprep.subr.bf16.mxu0 %v1449_v12 }
 0x104   : > { %1452 = vmatpush3.bf16.msra.mxu0 %v1449_v12 }
 0x107   : > { %1424 = vmatmul.mubr.msk.f32.vlgmr.msra.gmra.mrb[4].mxu0 %vm279_vm0, %v1709_v13 }
 0x108   : > { %1430 = vmatprep.mubr.msk.f32.mxu0 %vm279_vm0, %v1702_v5 }
 0x1da   : > { %v1716_v15 = vpop.f32.mrb[4].mxu0 }
 0x1db   : > { %v1718_v16 = vpop.f32.mrb[5].mxu0 }
 0x1dc   : > { %363 = vperm.xlu0 %1547, %v1718_v16  }
 0x1e0   : > { %368 = vperm.xlu0 %1547, %v1716_v15  }
 0x1e4   : > { %1548 = vset.pattern.permute.xlu0 %v1597_v40 }
 0x25b   : > { %v364_v17 = vpop.permute.xlu0 %363 }
 0x25c   : > { %v371_v18 = vsub.f32 %v1687_v2, %v364_v17  ;;  %v372_v19 = vsub.f32 %v1659_v1, %v364_v17 }
 0x25e   : > { %v375_v20 = vmul.f32 %v371_v18, %v371_v18  ;;  %v376_v21 = vmul.f32 %v372_v19, %v372_v19 }
 0x25f   : > { %v369_v22 = vpop.permute.xlu0 %368 }
 0x260   : > { %v373_v23 = vsub.f32 %v1696_v4, %v369_v22  ;;  %v374_v24 = vsub.f32 %v1691_v3, %v369_v22  ;;  %443 = vmatprep.mubr.f32.mxu1 %v376_v21 }
 0x261   : > { %444 = vmatmul.mubr.f32.vlgmr.msra.gmra.mrb[0].mxu1 %v375_v20 }
 0x262   : > { %v377_v25 = vmul.f32 %v373_v23, %v373_v23  ;;  %v378_v26 = vmul.f32 %v374_v24, %v374_v24 }
 0x264   : > { %448 = vmatprep.mubr.f32.mxu1 %v378_v26 }
 0x265   : > { %449 = vmatmul.mubr.f32.gmra.mrb[2].mxu1 %v377_v25 }
 0x334   : > { %v1333_v27 = vpop.f32.mrb[0].mxu1 }
 0x335   : > { %v1334_v28 = vpop.f32.mrb[1].mxu1 }
 0x336   : > { %v1335_v29 = vadd.f32 %v1334_v28, %v1333_v27 }
 0x338   : > { %v1336_v30 = vpop.f32.mrb[2].mxu1 }
 0x339   : > { %v1337_v31 = vpop.f32.mrb[3].mxu1 }
 0x33a   : > { %v1338_v32 = vadd.f32 %v1337_v31, %v1336_v30 }
 0x33c   : > { %v1469_v33 = vpack.c.bf16 %v1338_v32, %v1335_v29 }
 0x33e   : > { %1470 = vmatprep.subr.bf16.mxu0 %v1469_v33 }
 0x33f   : > { %1472 = vmatpush3.bf16.msra.mxu0 %v1469_v33 }
 0x340   : > { %1493 = vmatprep.subr.bf16.mxu0 %v1594_v0 }
 0x342   : > { %1431 = vmatmul.mubr.msk.f32.vlgmr.msra.gmra.mrb[6].mxu0 %vm279_vm0, %v1709_v13 }
 0x343   : > { %1494 = vmatpush3.bf16.msra.mxu0 %v1594_v0 }
 0x344   : > { %1495 = vmatprep.subr.bf16.mxu0 %v1594_v0 }
 0x347   : > { %1496 = vmatpush3.bf16.msra.mxu0 %v1594_v0 }
 0x348   : > { %1497 = vmatprep.subr.bf16.mxu0 %v1594_v0 }
 0x34b   : > { %1498 = vmatpush3.bf16.msra.mxu0 %v1594_v0 }
 0x34c   : > { %1499 = vmatprep.subr.bf16.mxu0 %v1594_v0 }
 0x34f   : > { %1500 = vmatpush3.bf16.msra.mxu0 %v1594_v0 }
 0x350   : > { %1501 = vmatprep.subr.bf16.mxu0 %v1594_v0 }
 0x353   : > { %1502 = vmatpush3.bf16.msra.mxu0 %v1594_v0 }
 0x354   : > { %1503 = vmatprep.subr.bf16.mxu0 %v1594_v0 }
 0x357   : > { %1504 = vmatpush3.bf16.msra.mxu0 %v1594_v0 }
 0x358   : > { %1505 = vmatprep.subr.bf16.mxu0 %v1594_v0 }
 0x35b   : > { %1506 = vmatpush3.bf16.msra.mxu0 %v1594_v0 }
 0x35c   : > { %1507 = vmatprep.subr.bf16.mxu0 %v1594_v0 }
 0x35f   : > { %1508 = vmatpush3.bf16.msra.mxu0 %v1594_v0 }
 0x415   : > { %v1432_v34 = vpop.f32.mrb[6].mxu0 }
 0x416   : > { %v520_v35 = vpop.f32.mrb[7].mxu0  ;;  %v526_v37 = vadd.f32 1e-05, %v1432_v34 }
 0x417   : > { %v521_v36 = vadd.f32 1e-05, %v520_v35 }
 0x419   : > { %1556 = vrsqrt.f32 %v521_v36 }
 0x41a   : > { %1558 = vrsqrt.f32 %v526_v37 }
 0x423   : > { %v1557_v38 = vpop.eup %1556 }
 0x424   : > { %533 = vrot.lane.b32.xlu1 %v1557_v38, %s1596_s25  ;;  %v1559_v39 = vpop.eup %1558 }
 0x428   : > { %535 = vrot.lane.b32.xlu1 %v1559_v39, %s1596_s25 }
 0x496   : > { %v534_v41 = vpop.permute.xlu1 %533 }
 0x497   : > { %v539_v42 = vmul.f32 %v534_v41, %v1702_v5 }
 0x499   : > { %543 = vrot.lane.b32.xlu0 %v539_v42, %s1598_s26 }
 0x49a   : > { %v536_v43 = vpop.permute.xlu1 %535 }
 0x49b   : > { %v540_v44 = vmul.f32 %v536_v43, %v1709_v13 }
 0x49d   : > { %545 = vrot.lane.b32.xlu1 %v540_v44, %s1598_s26 }
 0x50b   : > { %v544_v45 = vpop.permute.xlu0 %543 }
 0x50c   : > { %v549_v46 = vmul.f32 %v544_v45, %v1718_v16 }
 0x50e   : > { %553 = vrot.lane.b32.xlu0 %v549_v46, %s1599_s27  ;;  %v1813_v46 = vld [vmem:[%s1942_s1] sm:$0xff] }
 0x50f   : > { %v546_v47 = vpop.permute.xlu1 %545 }
 0x510   : > { %v550_v48 = vmul.f32 %v1716_v15, %v546_v47 }
 0x512   : > { %562 = vperm.xlu0 %1548, %v539_v42   ;;  %555 = vrot.lane.b32.xlu1 %v550_v48, %s1599_s27 }
 0x516   : > { %566 = vperm.xlu1 %1549, %v540_v44   ;;  %1551 = vset.pattern.permute.xlu0 %v1600_v49 }
 0x51a   : > { %1550 = vset.pattern.permute.xlu1 %v1600_v49 }
 0x580   : > { %v554_v50 = vpop.permute.xlu0 %553 }
 0x581   : > { %v559_v51 = vsub.f32 %v1702_v5, %v554_v50 }
 0x583   : > { %575 = vperm.xlu1 %1550, %v559_v51  }
 0x584   : > { %v556_v52 = vpop.permute.xlu1 %555 }
 0x585   : > { %v560_v53 = vsub.f32 %v1709_v13, %v556_v52 }
 0x587   : > { %580 = vperm.xlu0 %1551, %v560_v53  }
 0x591   : > { %v563_v54 = vpop.permute.xlu0 %562 }
 0x592   : > { %v569_v56 = vmul.f32 %v563_v54, %v1687_v2  ;;  %v570_v57 = vmul.f32 %v563_v54, %v1659_v1 }
 0x595   : > { %v567_v55 = vpop.permute.xlu1 %566 }
 0x596   : > { %v571_v61 = vmul.f32 %v567_v55, %v1696_v4  ;;  %v572_v62 = vmul.f32 %v567_v55, %v1691_v3 }
 0x602   : > { %v576_v58 = vpop.permute.xlu1 %575 }
 0x603   : > { %v583_v59 = vadd.f32 %v576_v58, %v569_v56  ;;  %v584_v60 = vadd.f32 %v576_v58, %v570_v57 }
 0x605   : > { %v1245_v63 = vmul.f32 -1.442695, %v583_v59  ;;  %v1246_v6 = vmul.f32 -1.442695, %v584_v60 }
 0x606   : > { %v581_v7 = vpop.permute.xlu0 %580 }
 0x607   : > { %1560 = vpow2.f32 %v1245_v63  ;;  %v585_v8 = vadd.f32 %v581_v7, %v571_v61  ;;  %v586_v9 = vadd.f32 %v581_v7, %v572_v62 }
 0x608   : > { %1562 = vpow2.f32 %v1246_v6 }
 0x609   : > { %v1247_v10 = vmul.f32 -1.442695, %v585_v8  ;;  %v1248_v11 = vmul.f32 -1.442695, %v586_v9 }
 0x60b   : > { %1564 = vpow2.f32 %v1247_v10 }
 0x60c   : > { %1566 = vpow2.f32 %v1248_v11 }
 0x611   : > { %v1561_v12 = vpop.eup %1560 }
 0x612   : > { %v1563_v15 = vpop.eup %1562  ;;  %v599_v16 = vadd.f32 1.0, %v1561_v12 }
 0x613   : > { %v600_v17 = vadd.f32 1.0, %v1563_v15 }
 0x614   : > { %1568 = vrcp.f32 %v599_v16 }
 0x615   : > { %v1565_v18 = vpop.eup %1564  ;;  %1570 = vrcp.f32 %v600_v17 }
 0x616   : > { %v1567_v19 = vpop.eup %1566  ;;  %v601_v20 = vadd.f32 1.0, %v1565_v18 }
 0x617   : > { %v602_v21 = vadd.f32 1.0, %v1567_v19 }
 0x618   : > { %1572 = vrcp.f32 %v601_v20 }
 0x619   : > { %1574 = vrcp.f32 %v602_v21 }
 0x61e   : > { %v1569_v22 = vpop.eup %1568 }
 0x61f   : > { %v1571_v23 = vpop.eup %1570  ;;  %vm611_vm1 = vcmp.gt.f32.partialorder %v1569_v22, 0.5  ;;  %v615_v24 = vmul.f32 %v1569_v22, %v1687_v2 }
 0x620   : > { %vm612_vm2 = vcmp.gt.f32.partialorder %v1571_v23, 0.5  ;;  %v616_v25 = vmul.f32 %v1571_v23, %v1659_v1 }
 0x621   : > { %v623_v26 = vsel %vm611_vm1, 0.0, %v615_v24  ;;  %v619_v32 = vsel %vm611_vm1, %v1687_v2, %v615_v24 }
 0x622   : > { %v1573_v27 = vpop.eup %1572  ;;  %v624_v28 = vsel %vm612_vm2, 0.0, %v616_v25  ;;  %v620_v2 = vsel %vm612_vm2, %v1659_v1, %v616_v25  ;;  %v1606_v1 = vmov 0.0  }
 0x623   : > { %v1575_v29 = vpop.eup %1574  ;;  %vm613_vm3 = vcmp.gt.f32.partialorder %v1573_v27, 0.5  ;;  %v617_v30 = vmul.f32 %v1573_v27, %v1696_v4  ;;  %894 = vmatprep.mubr.f32.mxu1 %v1606_v1 }
 0x624   : > { %vm614_vm4 = vcmp.gt.f32.partialorder %v1575_v29, 0.5  ;;  %v618_v31 = vmul.f32 %v1575_v29, %v1691_v3 }
 0x625   : > { %v625_v33 = vsel %vm613_vm3, 0.0, %v617_v30  ;;  %v621_v34 = vsel %vm613_vm3, %v1696_v4, %v617_v30  ;;  %v639_v4 = vlaneseq }
 0x626   : > { %v1767_v35 = vadd.f32 %v625_v33, %v619_v32  ;;  %v1769_v36 = vadd.f32 %v623_v26, %v621_v34  ;;  %v626_v37 = vsel %vm614_vm4, 0.0, %v618_v31  ;;  %v622_v38 = vsel %vm614_vm4, %v1691_v3, %v618_v31 }
 0x627   : > { %v1776_v39 = vadd.f32 %v624_v28, %v622_v38  ;;  %v1780_v40 = vadd.f32 %v626_v37, %v620_v2  ;;  %v1607_v3 = vmov 18   ;;  %v1805_v41 = vshrl.u32 %v639_v4, 7 }
 0x628   : > { %656 = vrot.lane.b32.xlu0 %v1767_v35, %s1596_s25  ;;  %635 = vrot.lane.b32.xlu1 %v1767_v35, %s1599_s27  ;;  %v1807_v44 = vand.u32 127, %v639_v4 }
 0x629   : > { %1552 = vset.pattern.permute.xlu0 %v1607_v3  ;;  %1553 = vset.pattern.permute.xlu1 %v1607_v3  ;;  %v646_v45 = vsub.s32 0, %v1805_v41  ;;  %v684_v58 = vsub.s32 2, %v1805_v41  ;;  %v703_v59 = vsub.s32 3, %v1805_v41  ;;  %v724_v10 = vsub.s32 5, %v1805_v41 }
 0x62a   : > { %vm641_vm5 = vcmp.lt.s32.totalorder %v1807_v44, 17  ;;  %vm660_vm6 = vcmp.lt.s32.totalorder %v1807_v44, 16  ;;  %vm679_vm7 = vcmp.lt.s32.totalorder %v1807_v44, 15  ;;  %vm698_vm8 = vcmp.lt.s32.totalorder %v1807_v44, 1 }
 0x62b   : > { %v647_v48 = vrot.slane %v1813_v46, %v646_v45  ;;  %v685_v9 = vrot.slane %v1813_v46, %v684_v58  ;;  %v704_v15 = vrot.slane %v1813_v46, %v703_v59  ;;  %vm719_vm9 = vcmp.lt.s32.totalorder %v1807_v44, 127 }
 0x62c   : > { %675 = vrot.lane.b32.xlu0 %v1767_v35, %s1601_s28  ;;  %637 = vrot.lane.b32.xlu1 %v1780_v40, %s1599_s27  ;;  %v725_v22 = vrot.slane %v1813_v46, %v724_v10  ;;  %v743_v34 = vsub.s32 6, %v1805_v41  ;;  %v762_v2 = vsub.s32 7, %v1805_v41  ;;  %vm738_vm10 = vcmp.lt.s32.totalorder %v1807_v44, 113 }
 0x62d   : > { %vm757_vm11 = vcmp.lt.s32.totalorder %v1807_v44, 112  ;;  %vm776_vm12 = vcmp.lt.s32.totalorder %v1807_v44, 111 }
 0x630   : > { %694 = vrot.lane.b32.xlu0 %v1767_v35, %s1602_s29  ;;  %658 = vrot.lane.b32.xlu1 %v1780_v40, %s1596_s25 }
 0x634   : > { %715 = vrot.lane.b32.xlu0 %v1767_v35, %s1603_s30  ;;  %677 = vrot.lane.b32.xlu1 %v1780_v40, %s1601_s28  ;;  %s197_s28 = scalar_lea.vmem %s1945_s4, %s1257_s17 }
 0x638   : > { %734 = vrot.lane.b32.xlu0 %v1767_v35, %s1604_s5  ;;  %696 = vrot.lane.b32.xlu1 %v1780_v40, %s1602_s29 }
 0x63c   : > { %753 = vrot.lane.b32.xlu0 %v1767_v35, %s1598_s26  ;;  %717 = vrot.lane.b32.xlu1 %v1780_v40, %s1603_s30 }
 0x640   : > { %772 = vrot.lane.b32.xlu0 %v1767_v35, %s1605_s6  ;;  %736 = vrot.lane.b32.xlu1 %v1780_v40, %s1604_s5 }
 0x644   : > { %755 = vrot.lane.b32.xlu1 %v1780_v40, %s1598_s26  ;;  %920 = vperm.xlu0 %1552, %v1702_v5   ;;  %v665_v5 = vsub.s32 1, %v1805_v41 }
 0x646   : > { %v666_v50 = vrot.slane %v1813_v46, %v665_v5 }
 0x648   : > { %774 = vrot.lane.b32.xlu1 %v1780_v40, %s1605_s6  ;;  %1555 = vset.pattern.permute.xlu0 %v1595_v14 }
 0x64c   : > { %924 = vperm.xlu1 %1553, %v1709_v13   ;;  %v1819_v13 = vld [vmem:[%s1942_s1 + $0x8] sm:$0xff] }
 0x64d   : > { %v651_v49 = vrot.slane %v1819_v13, %v646_v45  ;;  %v670_v51 = vrot.slane %v1819_v13, %v665_v5  ;;  %v689_v12 = vrot.slane %v1819_v13, %v684_v58  ;;  %v708_v16 = vrot.slane %v1819_v13, %v703_v59 }
 0x64e   : > { %v729_v23 = vrot.slane %v1819_v13, %v724_v10  ;;  %v748_v5 = vrot.slane %v1819_v13, %v743_v34  ;;  %v767_v41 = vrot.slane %v1819_v13, %v762_v2 }
 0x650   : > { %1554 = vset.pattern.permute.xlu1 %v1595_v14 }
 0x69a   : > { %v657_v42 = vpop.permute.xlu0 %656  ;;  %v636_v43 = vpop.permute.xlu1 %635 }
 0x69e   : > { %v676_v14 = vpop.permute.xlu0 %675  ;;  %v638_v47 = vpop.permute.xlu1 %637 }
 0x69f   : > { %v642_v52 = vsel %vm641_vm5, %v636_v43, %v638_v47  ;;  %v643_v53 = vsel %vm641_vm5, %v638_v47, %v636_v43  ;;  %v744_v43 = vrot.slane %v1813_v46, %v743_v34 }
 0x6a0   : > { %v652_v60 = vmul.f32 %v647_v48, %v643_v53  ;;  %v653_v61 = vmul.f32 %v651_v49, %v642_v52 }
 0x6a2   : > { %v695_v54 = vpop.permute.xlu0 %694  ;;  %v659_v55 = vpop.permute.xlu1 %658 }
 0x6a3   : > { %v661_v56 = vsel %vm660_vm6, %v657_v42, %v659_v55  ;;  %v662_v57 = vsel %vm660_vm6, %v659_v55, %v657_v42 }
 0x6a4   : > { %v671_v62 = vmul.f32 %v666_v50, %v662_v57  ;;  %v672_v63 = vmul.f32 %v670_v51, %v661_v56 }
 0x6a6   : > { %v1475_v6 = vpack.c.bf16 %v671_v62, %v652_v60  ;;  %v678_v7 = vpop.permute.xlu1 %677  ;;  %v1473_v8 = vpack.c.bf16 %v672_v63, %v653_v61  ;;  %v716_v11 = vpop.permute.xlu0 %715  ;;  %v793_v63 = vld [vmem:[%s1944_s3] sm:$0xff] }
 0x6a7   : > { %v680_v17 = vsel %vm679_vm7, %v676_v14, %v678_v7  ;;  %v681_v18 = vsel %vm679_vm7, %v678_v7, %v676_v14  ;;  %v763_v14 = vrot.slane %v1813_v46, %v762_v2  ;;  %v1250_v46 = vld [vmem:[%s1942_s1 + $0x18] ss:$0 sm:$0xff] }
 0x6a8   : > { %1474 = vmatprep.subr.bf16.mxu1 %v1473_v8  ;;  %v690_v24 = vmul.f32 %v685_v9, %v681_v18  ;;  %v691_v25 = vmul.f32 %v689_v12, %v680_v17 }
 0x6a9   : > { %1476 = vmatpush1.bf16.msra.mxu1 %v1475_v6  ;;  %v794_v6 = vld [vmem:[%s1944_s3 + $0x8] sm:$0xff] }
 0x6aa   : > { %v697_v19 = vpop.permute.xlu1 %696  ;;  %v735_v28 = vpop.permute.xlu0 %734 }
 0x6ab   : > { %v699_v20 = vsel %vm698_vm8, %v695_v54, %v697_v19  ;;  %v700_v21 = vsel %vm698_vm8, %v697_v19, %v695_v54  ;;  %v1249_v54 = vld [vmem:[%s1942_s1 + $0x10] ss:$0 sm:$0xff] }
 0x6ac   : > { %v709_v26 = vmul.f32 %v704_v15, %v700_v21  ;;  %v710_v27 = vmul.f32 %v708_v16, %v699_v20 }
 0x6ae   : > { %v1479_v29 = vpack.c.bf16 %v709_v26, %v690_v24  ;;  %v718_v30 = vpop.permute.xlu1 %717  ;;  %v1477_v31 = vpack.c.bf16 %v710_v27, %v691_v25  ;;  %v754_v45 = vpop.permute.xlu0 %753 }
 0x6af   : > { %v720_v32 = vsel %vm719_vm9, %v716_v11, %v718_v30  ;;  %v721_v33 = vsel %vm719_vm9, %v718_v30, %v716_v11 }
 0x6b0   : > { %v730_v37 = vmul.f32 %v725_v22, %v720_v32  ;;  %v731_v38 = vmul.f32 %v729_v23, %v721_v33  ;;  %1478 = vmatprep.subr.bf16.mxu1 %v1477_v31 }
 0x6b1   : > { %1480 = vmatpush1.bf16.msra.mxu1 %v1479_v29 }
 0x6b2   : > { %v1483_v3 = vpack.c.bf16 %v730_v37, %v1767_v35  ;;  %v737_v4 = vpop.permute.xlu1 %736  ;;  %v1481_v42 = vpack.c.bf16 %v731_v38, %v1780_v40  ;;  %v773_v13 = vpop.permute.xlu0 %772 }
 0x6b3   : > { %v739_v47 = vsel %vm738_vm10, %v735_v28, %v737_v4  ;;  %v740_v48 = vsel %vm738_vm10, %v737_v4, %v735_v28 }
 0x6b4   : > { %1482 = vmatprep.subr.bf16.mxu1 %v1481_v42  ;;  %v749_v40 = vmul.f32 %v744_v43, %v739_v47  ;;  %v750_v51 = vmul.f32 %v748_v5, %v740_v48 }
 0x6b5   : > { %1484 = vmatpush1.bf16.msra.mxu1 %v1483_v3 }
 0x6b6   : > { %v756_v35 = vpop.permute.xlu1 %755 }
 0x6b7   : > { %v758_v49 = vsel %vm757_vm11, %v754_v45, %v756_v35  ;;  %v759_v50 = vsel %vm757_vm11, %v756_v35, %v754_v45 }
 0x6b8   : > { %v768_v52 = vmul.f32 %v763_v14, %v758_v49  ;;  %v769_v53 = vmul.f32 %v767_v41, %v759_v50 }
 0x6ba   : > { %v1487_v55 = vpack.c.bf16 %v768_v52, %v749_v40  ;;  %v775_v56 = vpop.permute.xlu1 %774  ;;  %v1485_v57 = vpack.c.bf16 %v769_v53, %v750_v51 }
 0x6bb   : > { %v777_v58 = vsel %vm776_vm12, %v773_v13, %v775_v56  ;;  %v778_v59 = vsel %vm776_vm12, %v775_v56, %v773_v13 }
 0x6bc   : > { %v787_v60 = vmul.f32 %v1249_v54, %v777_v58  ;;  %v788_v44 = vmul.f32 %v1250_v46, %v778_v59  ;;  %1486 = vmatprep.subr.bf16.mxu1 %v1485_v57 }
 0x6bd   : > { %1488 = vmatpush1.bf16.msra.mxu1 %v1487_v55 }
 0x6be   : > { %v1491_v61 = vpack.c.bf16 %v1769_v36, %v787_v60  ;;  %v1489_v62 = vpack.c.bf16 %v1776_v39, %v788_v44  ;;  %v795_v36 = vld [vmem:[%s1944_s3 + $0x10] sm:$0xff]  ;;  %v796_v39 = vld [vmem:[%s1944_s3 + $0x18] sm:$0xff] }
 0x6c0   : > { %1490 = vmatprep.subr.bf16.mxu1 %v1489_v62 }
 0x6c1   : > { %1492 = vmatpush1.bf16.msra.mxu1 %v1491_v61 }
 0x6c2   : > { %1509 = vmatprep.subr.bf16.mxu1 %v1594_v0 }
 0x6c4   : > { %1251 = vmatmul.mubr.msk.f32.vlgmr.msra.gmra.mrb[4].mxu1 %vm817_vm13, %v793_v63 }
 0x6c5   : > { %900 = vmatprep.mubr.f32.mxu1 %v1606_v1  ;;  %1510 = vmatpush3.bf16.msra.mxu1 %v1594_v0 }
 0x6c6   : > { %1511 = vmatprep.subr.bf16.mxu1 %v1594_v0 }
 0x6c8   : > { %1252 = vmatmul.mubr.msk.f32.gmra.mrb[6].mxu1 %vm817_vm13, %v794_v6 }
 0x6c9   : > { %906 = vmatprep.mubr.f32.mxu1 %v1606_v1  ;;  %1512 = vmatpush3.bf16.msra.mxu1 %v1594_v0 }
 0x6ca   : > { %1513 = vmatprep.subr.bf16.mxu1 %v1594_v0 }
 0x6cb   : > { %v925_v11 = vpop.permute.xlu1 %924 }
 0x6cc   : > { %1253 = vmatmul.mubr.msk.f32.gmra.mrb[8].mxu1 %vm817_vm13, %v795_v36 }
 0x6cd   : > { %912 = vmatprep.mubr.f32.mxu1 %v1606_v1  ;;  %1514 = vmatpush3.bf16.msra.mxu1 %v1594_v0  ;;  %v921_v1 = vpop.permute.xlu0 %920 }
 0x6ce   : > { %1515 = vmatprep.subr.bf16.mxu1 %v1594_v0 }
 0x6d0   : > { %1254 = vmatmul.mubr.msk.f32.gmra.mrb[10].mxu1 %vm817_vm13, %v796_v39 }
 0x6d1   : > { %1516 = vmatpush3.bf16.msra.mxu1 %v1594_v0 }
 0x6d2   : > { %1517 = vmatprep.subr.bf16.mxu1 %v1594_v0 }
 0x6d5   : > { %1518 = vmatpush3.bf16.msra.mxu1 %v1594_v0 }
 0x6d6   : > { %1519 = vmatprep.subr.bf16.mxu1 %v1594_v0 }
 0x6d9   : > { %1520 = vmatpush3.bf16.msra.mxu1 %v1594_v0 }
 0x6da   : > { %1521 = vmatprep.subr.bf16.mxu1 %v1594_v0 }
 0x6dd   : > { %1522 = vmatpush3.bf16.msra.mxu1 %v1594_v0 }
 0x6de   : > { %1523 = vmatprep.subr.bf16.mxu1 %v1594_v0 }
 0x6e1   : > { %1524 = vmatpush3.bf16.msra.mxu1 %v1594_v0 }
 0x797   : > { %v896_v7 = vpop.f32.mrb[4].mxu1 }
 0x798   : > { %v898_v8 = vpop.f32.mrb[5].mxu1  ;;  %v1895_v10 = vadd.f32 %v921_v1, %v896_v7 }
 0x799   : > { %v1893_v9 = vadd.f32 %v921_v1, %v898_v8 }
 0x79b   : > { %v902_v12 = vpop.f32.mrb[6].mxu1  ;;  %995 = vmatprep.mubr.f32.mxu0 %v1893_v9 }
 0x79c   : > { %v904_v15 = vpop.f32.mrb[7].mxu1  ;;  %996 = vmatmul.mubr.f32.vlgmr.msra.gmra.mrb[8].mxu0 %v1895_v10  ;;  %v1901_v17 = vadd.f32 %v925_v11, %v902_v12 }
 0x79d   : > { %v1899_v16 = vadd.f32 %v925_v11, %v904_v15 }
 0x79f   : > { %v1903_v18 = vpop.f32.mrb[8].mxu1  ;;  %1000 = vmatprep.mubr.f32.mxu0 %v1899_v16 }
 0x7a0   : > { %v1906_v0 = vpop.f32.mrb[9].mxu1  ;;  %1001 = vmatmul.mubr.f32.gmra.mrb[10].mxu0 %v1901_v17 }
 0x7a1   : > { %1072 = vmatprep.mubr.f32.mxu1 %v1906_v0 }
 0x7a2   : > { %1073 = vmatmul.mubr.f32.vlgmr.msra.gmra.mrb[12].mxu1 %v1903_v18 }
 0x7a3   : > { %v1911_v19 = vpop.f32.mrb[10].mxu1 }
 0x7a4   : > { %v1913_v20 = vpop.f32.mrb[11].mxu1 }
 0x7a5   : > { %1077 = vmatprep.mubr.f32.mxu1 %v1913_v20 }
 0x7a6   : > { %1078 = vmatmul.mubr.f32.gmra.mrb[14].mxu1 %v1911_v19 }
 0x86f   : > { %v1375_v21 = vpop.f32.mrb[8].mxu0 }
 0x870   : > { %v1376_v22 = vpop.f32.mrb[9].mxu0 }
 0x871   : > { %v1377_v23 = vadd.f32 %v1376_v22, %v1375_v21 }
 0x873   : > { %v1378_v24 = vpop.f32.mrb[10].mxu0  ;;  %v1006_v26 = vmul.f32 0.00390625, %v1377_v23 }
 0x874   : > { %v1379_v25 = vpop.f32.mrb[11].mxu0 }
 0x875   : > { %v1380_v27 = vadd.f32 %v1379_v25, %v1378_v24  ;;  %v1413_v28 = vpop.f32.mrb[12].mxu1  ;;  %v1086_v32 = vsel %vm1085_vm14, %v1006_v26, -inf }
 0x876   : > { %v1414_v29 = vpop.f32.mrb[13].mxu1 }
 0x877   : > { %v1007_v30 = vmul.f32 0.00390625, %v1380_v27  ;;  %v1415_v31 = vadd.f32 %v1414_v29, %v1413_v28 }
 0x879   : > { %v1087_v33 = vsel %vm1085_vm14, %v1007_v30, -inf  ;;  %v1416_v34 = vpop.f32.mrb[14].mxu1  ;;  %v1083_v2 = vmul.f32 0.00390625, %v1415_v31 }
 0x87a   : > { %v1088_v37 = vmax.f32 %v1086_v32, %v1087_v33  ;;  %v1417_v38 = vpop.f32.mrb[15].mxu1 }
 0x87b   : > { %v1418_v3 = vadd.f32 %v1417_v38, %v1416_v34  ;;  %v1095_v45 = vsel %vm1085_vm14, %v1083_v2, -inf }
 0x87c   : > { %v1089_v4 = vrot.slane %v1088_v37, 4 }
 0x87d   : > { %v1084_v42 = vmul.f32 0.00390625, %v1418_v3 }
 0x87e   : > { %v1090_v43 = vmax.f32 %v1088_v37, %v1089_v4 }
 0x87f   : > { %v1096_v5 = vsel %vm1085_vm14, %v1084_v42, -inf }
 0x880   : > { %v1091_v14 = vrot.slane %v1090_v43, 2  ;;  %v1097_v41 = vmax.f32 %v1095_v45, %v1096_v5 }
 0x882   : > { %v1098_v47 = vrot.slane %v1097_v41, 4  ;;  %v1092_v48 = vmax.f32 %v1090_v43, %v1091_v14 }
 0x884   : > { %v1099_v35 = vmax.f32 %v1097_v41, %v1098_v47  ;;  %v1093_v50 = vrot.slane %v1092_v48, 1 }
 0x886   : > { %v1100_v49 = vrot.slane %v1099_v35, 2  ;;  %v1094_v52 = vmax.f32 %v1092_v48, %v1093_v50 }
 0x888   : > { %v1101_v40 = vmax.f32 %v1099_v35, %v1100_v49 }
 0x88a   : > { %v1102_v51 = vrot.slane %v1101_v40, 1 }
 0x88c   : > { %v1103_v53 = vmax.f32 %v1101_v40, %v1102_v51 }
 0x88e   : > { %v1104_v54 = vmax.f32 %v1094_v52, %v1103_v53 }
 0x890   : > { %v1105_v46 = vsub.f32 %v1006_v26, %v1104_v54  ;;  %v1111_v13 = vsub.f32 %v1083_v2, %v1104_v54  ;;  %v1112_v55 = vsub.f32 %v1084_v42, %v1104_v54  ;;  %v1106_v56 = vsub.f32 %v1007_v30, %v1104_v54 }
 0x892   : > { %v1107_v57 = vmul.f32 1.442695, %v1105_v46  ;;  %v1113_v58 = vmul.f32 1.442695, %v1111_v13  ;;  %v1115_v59 = vmul.f32 1.442695, %v1112_v55 }
 0x893   : > { %v1109_v60 = vmul.f32 1.442695, %v1106_v56 }
 0x894   : > { %1576 = vpow2.f32 %v1107_v57 }
 0x895   : > { %1578 = vpow2.f32 %v1113_v58 }
 0x896   : > { %1580 = vpow2.f32 %v1115_v59 }
 0x897   : > { %1582 = vpow2.f32 %v1109_v60 }
 0x89e   : > { %v1577_v44 = vpop.eup %1576 }
 0x89f   : > { %v1579_v61 = vpop.eup %1578  ;;  %v1117_v6 = vsel %vm1085_vm14, %v1577_v44, 0.0 }
 0x8a0   : > { %v1581_v62 = vpop.eup %1580  ;;  %v1126_v63 = vsel %vm1085_vm14, %v1579_v61, 0.0 }
 0x8a1   : > { %v1583_v36 = vpop.eup %1582  ;;  %v1127_v39 = vsel %vm1085_vm14, %v1581_v62, 0.0 }
 0x8a2   : > { %v1128_v1 = vadd.f32 %v1127_v39, %v1126_v63  ;;  %v1118_v7 = vsel %vm1085_vm14, %v1583_v36, 0.0 }
 0x8a3   : > { %v1119_v8 = vadd.f32 %v1118_v7, %v1117_v6 }
 0x8a4   : > { %v1129_v11 = vrot.slane %v1128_v1, 4 }
 0x8a5   : > { %v1120_v12 = vrot.slane %v1119_v8, 4 }
 0x8a6   : > { %v1130_v15 = vadd.f32 %v1129_v11, %v1128_v1 }
 0x8a7   : > { %v1121_v21 = vadd.f32 %v1120_v12, %v1119_v8 }
 0x8a8   : > { %v1131_v22 = vrot.slane %v1130_v15, 2 }
 0x8a9   : > { %v1122_v23 = vrot.slane %v1121_v21, 2 }
 0x8aa   : > { %v1132_v24 = vadd.f32 %v1131_v22, %v1130_v15 }
 0x8ab   : > { %v1123_v25 = vadd.f32 %v1122_v23, %v1121_v21 }
 0x8ac   : > { %v1133_v26 = vrot.slane %v1132_v24, 1 }
 0x8ad   : > { %v1124_v27 = vrot.slane %v1123_v25, 1 }
 0x8ae   : > { %v1134_v28 = vadd.f32 %v1133_v26, %v1132_v24 }
 0x8af   : > { %v1125_v29 = vadd.f32 %v1124_v27, %v1123_v25 }
 0x8b1   : > { %v1135_v30 = vadd.f32 %v1134_v28, %v1125_v29 }
 0x8b3   : > { %1584 = vrcp.f32 %v1135_v30 }
 0x8bd   : > { %v1585_v31 = vpop.eup %1584 }
 0x8be   : > { %v1138_v32 = vmul.f32 %v1585_v31, %v1583_v36  ;;  %v1137_v33 = vmul.f32 %v1585_v31, %v1577_v44  ;;  %v1139_v34 = vmul.f32 %v1585_v31, %v1579_v61  ;;  %v1140_v37 = vmul.f32 %v1585_v31, %v1581_v62 }
 0x8c0   : > { %1148 = vperm.xlu0 %1555, %v1138_v32   ;;  %1143 = vperm.xlu1 %1554, %v1137_v33  }
 0x8c4   : > { %1157 = vperm.xlu1 %1554, %v1139_v34  }
 0x8c8   : > { %1162 = vperm.xlu1 %1554, %v1140_v37  }
 0x93f   : > { %v1144_v38 = vpop.permute.xlu1 %1143  ;;  %v1149_v45 = vpop.permute.xlu0 %1148 }
 0x940   : > { %v1151_v3 = vmul.f32 %v1144_v38, %v1895_v10  ;;  %v1152_v4 = vmul.f32 %v1144_v38, %v1893_v9  ;;  %v1153_v47 = vmul.f32 %v1149_v45, %v1901_v17  ;;  %v1154_v48 = vmul.f32 %v1149_v45, %v1899_v16 }
 0x943   : > { %v1158_v2 = vpop.permute.xlu1 %1157 }
 0x944   : > { %v1165_v42 = vmul.f32 %v1158_v2, %v1903_v18  ;;  %v1166_v43 = vmul.f32 %v1158_v2, %v1906_v0 }
 0x946   : > { %v1169_v5 = vadd.f32 %v1165_v42, %v1151_v3  ;;  %v1170_v14 = vadd.f32 %v1166_v43, %v1152_v4 }
 0x947   : > { %v1163_v41 = vpop.permute.xlu1 %1162 }
 0x948   : > { %1173 = vst [vmem:[%s197_s28] sm:$0xff] %v1169_v5  ;;  %1174 = vst [vmem:[%s197_s28 + $0x8] sm:$0xff] %v1170_v14  ;;  %v1167_v9 = vmul.f32 %v1163_v41, %v1911_v19  ;;  %v1168_v10 = vmul.f32 %v1163_v41, %v1913_v20 }
 0x94a   : > { %v1171_v18 = vadd.f32 %v1167_v9, %v1153_v47  ;;  %v1172_v0 = vadd.f32 %v1168_v10, %v1154_v48 }
 0x94c   : > { %1175 = vst [vmem:[%s197_s28 + $0x10] sm:$0xff] %v1171_v18  ;;  %1176 = vst [vmem:[%s197_s28 + $0x18] sm:$0xff] %v1172_v0 }
 0x94d PF: > { %s14_s15 = sadd.s32 1, %s1592_s15  }
 0x94e   : > { %p11_p4 = scmp.ge.s32.totalorder %s14_s15, 4  }
 0x950   :  { %13 = sbr.rel (!%p11_p4) target bundleno = 1 (0x1), region = 66 }

</bundles_post_ra>
